<compile_context>
chip_gen: v7x
topology: tpu7x:2x2x1
jax: 0.10.0
libtpu: 0.0.40
codegen_flags: <defaults>
</compile_context>

<pallas_src>
import jax
import jax.numpy as jnp
from jax.experimental import pallas as pl
from jax.experimental.pallas import tpu as pltpu

RANK = 16
LN_EPS = 1e-5  # PyTorch nn.LayerNorm default eps


def _round_up(x, m):
    return ((x + m - 1) // m) * m


# ----------------------------- Pallas kernel -------------------------------
def _low_rank_fusion_kernel(
    x_ref,      # (n, TB, in_dim)   feature-major batch tile (f32)
    fw_ref,     # (in_dim, Mp)      fused transition+factor weights (bf16, zero-padded)
    fb_ref,     # (1, Mp)           fused bias (f32, zero-padded)
    w1_ref,     # (Mp, D)           neck linear 1 weight (bf16, pre-transposed, zero rows)
    b1_ref,     # (1, D)            f32
    g_ref,      # (1, D)            LayerNorm gamma (f32)
    be_ref,     # (1, D)            LayerNorm beta (f32)
    w2_ref,     # (D, D)            neck linear 2 weight (bf16, pre-transposed)
    b2_ref,     # (1, D)            f32
    out_ref,    # (TB, D)           f32
):
    n, tb, in_dim = x_ref.shape
    mp = fw_ref.shape[1]

    # --- merged transition+factor matmul: one MXU weight push for all n
    #     features (bf16 operands, f32 accumulation); fb added once. ---------
    x2 = x_ref[...].reshape(n * tb, in_dim)               # free outer-dim merge (tb % 8 == 0)
    z = jnp.dot(x2.astype(jnp.bfloat16), fw_ref[...],
                preferred_element_type=jnp.float32) + fb_ref[...]
    z = z.reshape(n, tb, mp)

    # --- feature product: full-vreg f32 VPU multiplies, statically unrolled -
    p = z[0]
    for k in range(1, n):
        p = p * z[k]

    # --- neck: Linear -> LayerNorm (one-pass stats) -> ReLU -> Linear -------
    h = jnp.dot(p.astype(jnp.bfloat16), w1_ref[...],
                preferred_element_type=jnp.float32) + b1_ref[...]
    mu = jnp.mean(h, axis=-1, keepdims=True)
    msq = jnp.mean(h * h, axis=-1, keepdims=True)
    var = msq - mu * mu
    hn = (h - mu) * jax.lax.rsqrt(var + LN_EPS) * g_ref[...] + be_ref[...]
    hr = jnp.maximum(hn, 0.0)
    out_ref[...] = (
        jnp.dot(hr.astype(jnp.bfloat16), w2_ref[...],
                preferred_element_type=jnp.float32) + b2_ref[...]
    )


# ------------------------------- wrapper ------------------------------------
def low_rank_fusion_forward(x, kp, *, num_feat, in_dim, out_dim, tile_b=1024):
    """x: (batch*num_feat, in_dim) float32 -> (batch, out_dim) float32."""
    b = x.shape[0] // num_feat
    n = num_feat
    D = out_dim
    Mp = kp["fw"].shape[1]

    # feature-major layout: (n, b, in_dim)
    # (kept wrapper-side; removing it only matters if profiling shows the
    #  kernel HBM-bound on v5e after the bf16 MXU change)
    x3 = x.reshape(b, n, in_dim).transpose(1, 0, 2)

    # batch tile: multiple of 8 (sublane); pad the batch to a multiple of it.
    tb = min(tile_b, _round_up(b, 8))
    # v7x: guarantee >= 2 grid steps when the batch allows it so the
    # "parallel" batch axis actually shards across both TensorCores
    # (no-op beyond a little extra padding on single-TC v5e/v6e).
    if b > 8 and _round_up(b, tb) // tb < 2:
        tb = _round_up((b + 1) // 2, 8)
    bp = _round_up(b, tb)
    if bp != b:
        x3 = jnp.pad(x3, ((0, 0), (0, bp - b), (0, 0)))

    def full(shape):
        return pl.BlockSpec(shape, lambda i: (0,) * len(shape))

    out = pl.pallas_call(
        _low_rank_fusion_kernel,
        out_shape=jax.ShapeDtypeStruct((bp, D), jnp.float32),
        grid=(bp // tb,),
        in_specs=[
            pl.BlockSpec((n, tb, in_dim), lambda i: (0, i, 0)),  # x, one batch tile
            full((in_dim, Mp)),   # fw (fused, bf16)
            full((1, Mp)),        # fb (fused, f32)
            full((Mp, D)),        # w1 (bf16)
            full((1, D)),         # b1
            full((1, D)),         # gamma
            full((1, D)),         # beta
            full((D, D)),         # w2 (bf16)
            full((1, D)),         # b2
        ],
        out_specs=pl.BlockSpec((tb, D), lambda i: (i, 0)),
        compiler_params=pltpu.CompilerParams(
            dimension_semantics=("parallel",),
            # the merged (n*tb, Mp) f32 z-slab is the largest live value at
            # big tiles; raise the scoped limit above the 16/32 MiB defaults
            # (still well under v7x's 64 MiB physical VMEM).
            vmem_limit_bytes=48 * 1024 * 1024,
        ),
    )(
        x3, kp["fw"], kp["fb"], kp["w1"], kp["b1"],
        kp["gamma"], kp["beta"], kp["w2"], kp["b2"],
    )
    return out[:b]


# ----------------------- parameter setup (deterministic) --------------------
def init_torch_style_params(key, num_feat, in_dim, out_dim):
    """Parameters in the same layout as the PyTorch module (deterministic)."""
    D, R = out_dim, RANK
    ks = jax.random.split(key, 8)
    p = {}
    p["factor"] = jax.random.normal(ks[0], (R, D + 1, D + 1), jnp.float32)       # randn
    p["wt_t"] = jax.random.normal(ks[1], (D, in_dim), jnp.float32) / jnp.sqrt(in_dim)
    p["bt"] = 0.01 * jax.random.normal(ks[2], (D,), jnp.float32)
    p["w1_t"] = jax.random.normal(ks[3], (D, R * (D + 1)), jnp.float32) / jnp.sqrt(R * (D + 1))
    p["b1"] = 0.01 * jax.random.normal(ks[4], (D,), jnp.float32)
    p["gamma"] = jnp.ones((D,), jnp.float32)
    p["beta"] = jnp.zeros((D,), jnp.float32)
    p["w2_t"] = jax.random.normal(ks[5], (D, D), jnp.float32) / jnp.sqrt(D)
    p["b2"] = 0.01 * jax.random.normal(ks[6], (D,), jnp.float32)
    return p


def to_kernel_params(p, in_dim, out_dim):
    """Pre-transpose / fold / pad / quantize parameters for the kernel.

    - transition Linear fused into the factor application (exact: linear∘linear).
    - M = R*(D+1) zero-padded to the next multiple of 128 (lane-dense); exact.
    - MXU operand matrices (fw, w1, w2) stored as bf16 (f32 accumulation in
      kernel); biases / LayerNorm affine stay f32.
    """
    D, R = out_dim, RANK
    M = R * (D + 1)
    Mp = _round_up(M, 128)

    factor = p["factor"]                                   # (R, D+1, D+1)
    fw_factor = factor[:, :, 1:].reshape(M, D).T           # (D, M)
    fb_factor = factor[:, :, 0].reshape(M)                 # (M,)

    wt = p["wt_t"].T                                       # (in_dim, D)
    bt = p["bt"]                                           # (D,)

    fw = wt @ fw_factor                                    # (in_dim, M)  fused weights
    fb = bt @ fw_factor + fb_factor                        # (M,)         fused bias

    fw = jnp.pad(fw, ((0, 0), (0, Mp - M))).astype(jnp.bfloat16)     # (in_dim, Mp)
    fb = jnp.pad(fb, ((0, Mp - M),))[None, :]                        # (1, Mp) f32
    w1 = jnp.pad(p["w1_t"].T, ((0, Mp - M), (0, 0))).astype(jnp.bfloat16)  # (Mp, D)

    return {
        "fw": fw,
        "fb": fb,
        "w1": w1,
        "b1": p["b1"][None, :],
        "gamma": p["gamma"][None, :],
        "beta": p["beta"][None, :],
        "w2": p["w2_t"].T.astype(jnp.bfloat16),            # (D, D)
        "b2": p["b2"][None, :],
    }


# --------------------------- references --------------------------------------
def reference_forward_f32(x, p, *, num_feat, in_dim, out_dim):
    """Pure-f32 reference with the original PyTorch-module semantics."""
    b = x.shape[0] // num_feat
    n = num_feat
    xr = x.reshape(b, n, in_dim).transpose(1, 0, 2)               # (n, b, in)
    xt = xr @ p["wt_t"].T + p["bt"]                               # (n, b, D)
    ones = jnp.ones((n, b, 1), jnp.float32)
    xc = jnp.concatenate([ones, xt], axis=-1)                     # (n, b, D+1)
    z = jnp.einsum("rij,nbj->nbri", p["factor"], xc)              # (n, b, R, D+1)
    zp = jnp.prod(z, axis=0)                                      # (b, R, D+1)
    flat = zp.reshape(b, -1)                                      # (b, R*(D+1))
    h = flat @ p["w1_t"].T + p["b1"]
    mu = h.mean(-1, keepdims=True)
    var = ((h - mu) ** 2).mean(-1, keepdims=True)
    hn = (h - mu) / jnp.sqrt(var + LN_EPS) * p["gamma"] + p["beta"]
    hr = jnp.maximum(hn, 0.0)
    return hr @ p["w2_t"].T + p["b2"]


def reference_forward_kernel_math(x, kp, *, num_feat, in_dim):
    """Reference that mirrors the kernel's bf16-operand / f32-accumulate math."""
    b = x.shape[0] // num_feat
    n = num_feat
    x3 = x.reshape(b, n, in_dim).transpose(1, 0, 2).astype(jnp.bfloat16)   # (n, b, in)
    z = jnp.einsum("nbi,im->nbm", x3, kp["fw"],
                   preferred_element_type=jnp.float32) + kp["fb"]
    p = jnp.prod(z, axis=0)                                                # (b, Mp) f32
    h = jnp.dot(p.astype(jnp.bfloat16), kp["w1"],
                preferred_element_type=jnp.float32) + kp["b1"]
    mu = jnp.mean(h, -1, keepdims=True)
    var = jnp.mean(h * h, -1, keepdims=True) - mu * mu
    hn = (h - mu) * jax.lax.rsqrt(var + LN_EPS) * kp["gamma"] + kp["beta"]
    hr = jnp.maximum(hn, 0.0)
    return jnp.dot(hr.astype(jnp.bfloat16), kp["w2"],
                   preferred_element_type=jnp.float32) + kp["b2"]


# ---------------------------------- main -------------------------------------
if __name__ == "__main__":
    num_feat, in_dim, out_dim = 4, 32, 16

    key = jax.random.PRNGKey(0)
    kp_key, kx_key = jax.random.split(key)
    torch_params = init_torch_style_params(kp_key, num_feat, in_dim, out_dim)
    kernel_params = to_kernel_params(torch_params, in_dim, out_dim)

    # Configs exercise: forced 2-step grid with padded remainder (v7x path),
    # tiny single-tile batch, and an explicit multi-step tiled batch.
    configs = [
        {"batch": 20},                   # tb forced to 16 -> 2 grid steps + padding
        {"batch": 2},                    # single step, padded to one sublane tile
        {"batch": 300, "tile_b": 128},   # 3-step grid, padded remainder
    ]

    for i, cfg in enumerate(configs):
        batch = cfg["batch"]
        tile_b = cfg.get("tile_b", 1024)
        kx = jax.random.fold_in(kx_key, i)
        x = jax.random.normal(kx, (batch * num_feat, in_dim), jnp.float32)

        out = low_rank_fusion_forward(
            x, kernel_params,
            num_feat=num_feat, in_dim=in_dim, out_dim=out_dim, tile_b=tile_b,
        )
        out = jax.block_until_ready(out)
        assert out.shape == (batch, out_dim), out.shape

        # Tight check: same bf16-operand / f32-accumulate math as the kernel.
        ref_k = reference_forward_kernel_math(
            x, kernel_params, num_feat=num_feat, in_dim=in_dim
        )
        if not bool(jnp.allclose(out, ref_k, rtol=2e-3, atol=2e-3)):
            raise AssertionError(
                f"config {cfg}: mismatch vs kernel-math reference, "
                f"max abs diff = {float(jnp.max(jnp.abs(out - ref_k)))}"
            )

        # Loose sanity check: original module semantics in pure f32
        # (bf16 MXU operands contribute ~1% relative error on worst elements).
        ref_f = reference_forward_f32(
            x, torch_params, num_feat=num_feat, in_dim=in_dim, out_dim=out_dim
        )
        if not bool(jnp.allclose(out, ref_f, rtol=1e-1, atol=1e-1)):
            raise AssertionError(
                f"config {cfg}: mismatch vs f32 module reference, "
                f"max abs diff = {float(jnp.max(jnp.abs(out - ref_f)))}"
            )

    print("KERNEL_OK")
</pallas_src>

<mosaic_0001>
module attributes {stable_mosaic.version = 11 : i64} {
  func.func @_low_rank_fusion_kernel(%arg0: i32, %arg1: memref<4x16x32xf32, #tpu.memory_space<vmem>>, %arg2: memref<32x384xbf16, #tpu.memory_space<vmem>>, %arg3: memref<1x384xf32, #tpu.memory_space<vmem>>, %arg4: memref<384x16xbf16, #tpu.memory_space<vmem>>, %arg5: memref<1x16xf32, #tpu.memory_space<vmem>>, %arg6: memref<1x16xf32, #tpu.memory_space<vmem>>, %arg7: memref<1x16xf32, #tpu.memory_space<vmem>>, %arg8: memref<16x16xbf16, #tpu.memory_space<vmem>>, %arg9: memref<1x16xf32, #tpu.memory_space<vmem>>, %arg10: memref<16x16xf32, #tpu.memory_space<vmem>>) attributes {dimension_semantics = [#tpu.dimension_semantics<parallel>], iteration_bounds = array<i64: 2>, scalar_prefetch = 0 : i64, scratch_operands = 0 : i64, tpu.core_type = #tpu.core_type<tc>, window_params = [{transform_indices = @transform_0, window_bounds = array<i64: 4, 16, 32>}, {pipeline_mode = #tpu.pipeline_mode<synchronous>, transform_indices = @transform_1, window_bounds = array<i64: 32, 384>}, {pipeline_mode = #tpu.pipeline_mode<synchronous>, transform_indices = @transform_2, window_bounds = array<i64: 1, 384>}, {pipeline_mode = #tpu.pipeline_mode<synchronous>, transform_indices = @transform_3, window_bounds = array<i64: 384, 16>}, {pipeline_mode = #tpu.pipeline_mode<synchronous>, transform_indices = @transform_4, window_bounds = array<i64: 1, 16>}, {pipeline_mode = #tpu.pipeline_mode<synchronous>, transform_indices = @transform_5, window_bounds = array<i64: 1, 16>}, {pipeline_mode = #tpu.pipeline_mode<synchronous>, transform_indices = @transform_6, window_bounds = array<i64: 1, 16>}, {pipeline_mode = #tpu.pipeline_mode<synchronous>, transform_indices = @transform_7, window_bounds = array<i64: 16, 16>}, {pipeline_mode = #tpu.pipeline_mode<synchronous>, transform_indices = @transform_8, window_bounds = array<i64: 1, 16>}, {transform_indices = @transform_9, window_bounds = array<i64: 16, 16>}]} {
    %c0 = arith.constant 0 : index
    %c0_0 = arith.constant 0 : index
    %c0_1 = arith.constant 0 : index
    %0 = vector.load %arg1[%c0, %c0_0, %c0_1] : memref<4x16x32xf32, #tpu.memory_space<vmem>>, vector<4x16x32xf32>
    %1 = vector.shape_cast %0 : vector<4x16x32xf32> to vector<64x32xf32>
    %2 = arith.truncf %1 : vector<64x32xf32> to vector<64x32xbf16>
    %c0_2 = arith.constant 0 : index
    %c0_3 = arith.constant 0 : index
    %3 = vector.load %arg2[%c0_2, %c0_3] : memref<32x384xbf16, #tpu.memory_space<vmem>>, vector<32x384xbf16>
    %cst = arith.constant dense<0.000000e+00> : vector<64x384xf32>
    %4 = tpu.matmul %2, %3, %cst {dimension_numbers = #tpu.dot_dimension_numbers<[1], [0], [0], [1], [0, 0, 1, 1], [], []>} : vector<64x32xbf16>, vector<32x384xbf16>, vector<64x384xf32> -> vector<64x384xf32>
    %c0_4 = arith.constant 0 : index
    %c0_5 = arith.constant 0 : index
    %5 = vector.load %arg3[%c0_4, %c0_5] : memref<1x384xf32, #tpu.memory_space<vmem>>, vector<1x384xf32>
    %6 = vector.broadcast %5 : vector<1x384xf32> to vector<64x384xf32>
    %7 = arith.addf %4, %6 : vector<64x384xf32>
    %8 = vector.shape_cast %7 : vector<64x384xf32> to vector<4x16x384xf32>
    %9 = vector.extract_strided_slice %8 {offsets = [0, 0, 0], sizes = [1, 16, 384], strides = [1, 1, 1]} : vector<4x16x384xf32> to vector<1x16x384xf32>
    %10 = vector.shape_cast %9 : vector<1x16x384xf32> to vector<16x384xf32>
    %11 = vector.extract_strided_slice %8 {offsets = [1, 0, 0], sizes = [1, 16, 384], strides = [1, 1, 1]} : vector<4x16x384xf32> to vector<1x16x384xf32>
    %12 = vector.shape_cast %11 : vector<1x16x384xf32> to vector<16x384xf32>
    %13 = arith.mulf %10, %12 : vector<16x384xf32>
    %14 = vector.extract_strided_slice %8 {offsets = [2, 0, 0], sizes = [1, 16, 384], strides = [1, 1, 1]} : vector<4x16x384xf32> to vector<1x16x384xf32>
    %15 = vector.shape_cast %14 : vector<1x16x384xf32> to vector<16x384xf32>
    %16 = arith.mulf %13, %15 : vector<16x384xf32>
    %17 = vector.extract_strided_slice %8 {offsets = [3, 0, 0], sizes = [1, 16, 384], strides = [1, 1, 1]} : vector<4x16x384xf32> to vector<1x16x384xf32>
    %18 = vector.shape_cast %17 : vector<1x16x384xf32> to vector<16x384xf32>
    %19 = arith.mulf %16, %18 : vector<16x384xf32>
    %20 = arith.truncf %19 : vector<16x384xf32> to vector<16x384xbf16>
    %c0_6 = arith.constant 0 : index
    %c0_7 = arith.constant 0 : index
    %21 = vector.load %arg4[%c0_6, %c0_7] : memref<384x16xbf16, #tpu.memory_space<vmem>>, vector<384x16xbf16>
    %cst_8 = arith.constant dense<0.000000e+00> : vector<16x16xf32>
    %22 = tpu.matmul %20, %21, %cst_8 {dimension_numbers = #tpu.dot_dimension_numbers<[1], [0], [0], [1], [0, 0, 1, 1], [], []>} : vector<16x384xbf16>, vector<384x16xbf16>, vector<16x16xf32> -> vector<16x16xf32>
    %c0_9 = arith.constant 0 : index
    %c0_10 = arith.constant 0 : index
    %23 = vector.load %arg5[%c0_9, %c0_10] : memref<1x16xf32, #tpu.memory_space<vmem>>, vector<1x16xf32>
    %24 = vector.broadcast %23 : vector<1x16xf32> to vector<16x16xf32>
    %25 = arith.addf %22, %24 : vector<16x16xf32>
    %cst_11 = arith.constant dense<0.000000e+00> : vector<16xf32>
    %26 = vector.multi_reduction <add>, %25, %cst_11 [1] : vector<16x16xf32> to vector<16xf32>
    %27 = vector.shape_cast %26 : vector<16xf32> to vector<16x1xf32>
    %cst_12 = arith.constant 1.600000e+01 : f32
    %28 = vector.broadcast %cst_12 : f32 to vector<16x1xf32>
    %29 = arith.divf %27, %28 : vector<16x1xf32>
    %30 = arith.mulf %25, %25 : vector<16x16xf32>
    %cst_13 = arith.constant dense<0.000000e+00> : vector<16xf32>
    %31 = vector.multi_reduction <add>, %30, %cst_13 [1] : vector<16x16xf32> to vector<16xf32>
    %32 = vector.shape_cast %31 : vector<16xf32> to vector<16x1xf32>
    %cst_14 = arith.constant 1.600000e+01 : f32
    %33 = vector.broadcast %cst_14 : f32 to vector<16x1xf32>
    %34 = arith.divf %32, %33 : vector<16x1xf32>
    %35 = arith.mulf %29, %29 : vector<16x1xf32>
    %36 = arith.subf %34, %35 : vector<16x1xf32>
    %37 = vector.broadcast %29 : vector<16x1xf32> to vector<16x16xf32>
    %38 = arith.subf %25, %37 : vector<16x16xf32>
    %cst_15 = arith.constant 9.99999974E-6 : f32
    %39 = vector.broadcast %cst_15 : f32 to vector<16x1xf32>
    %40 = arith.addf %36, %39 : vector<16x1xf32>
    %41 = math.rsqrt %40 : vector<16x1xf32>
    %42 = vector.broadcast %41 : vector<16x1xf32> to vector<16x16xf32>
    %43 = arith.mulf %38, %42 : vector<16x16xf32>
    %c0_16 = arith.constant 0 : index
    %c0_17 = arith.constant 0 : index
    %44 = vector.load %arg6[%c0_16, %c0_17] : memref<1x16xf32, #tpu.memory_space<vmem>>, vector<1x16xf32>
    %45 = vector.broadcast %44 : vector<1x16xf32> to vector<16x16xf32>
    %46 = arith.mulf %43, %45 : vector<16x16xf32>
    %c0_18 = arith.constant 0 : index
    %c0_19 = arith.constant 0 : index
    %47 = vector.load %arg7[%c0_18, %c0_19] : memref<1x16xf32, #tpu.memory_space<vmem>>, vector<1x16xf32>
    %48 = vector.broadcast %47 : vector<1x16xf32> to vector<16x16xf32>
    %49 = arith.addf %46, %48 : vector<16x16xf32>
    %cst_20 = arith.constant 0.000000e+00 : f32
    %50 = vector.broadcast %cst_20 : f32 to vector<16x16xf32>
    %51 = arith.maximumf %49, %50 : vector<16x16xf32>
    %52 = arith.truncf %51 : vector<16x16xf32> to vector<16x16xbf16>
    %c0_21 = arith.constant 0 : index
    %c0_22 = arith.constant 0 : index
    %53 = vector.load %arg8[%c0_21, %c0_22] : memref<16x16xbf16, #tpu.memory_space<vmem>>, vector<16x16xbf16>
    %cst_23 = arith.constant dense<0.000000e+00> : vector<16x16xf32>
    %54 = tpu.matmul %52, %53, %cst_23 {dimension_numbers = #tpu.dot_dimension_numbers<[1], [0], [0], [1], [0, 0, 1, 1], [], []>} : vector<16x16xbf16>, vector<16x16xbf16>, vector<16x16xf32> -> vector<16x16xf32>
    %c0_24 = arith.constant 0 : index
    %c0_25 = arith.constant 0 : index
    %55 = vector.load %arg9[%c0_24, %c0_25] : memref<1x16xf32, #tpu.memory_space<vmem>>, vector<1x16xf32>
    %56 = vector.broadcast %55 : vector<1x16xf32> to vector<16x16xf32>
    %57 = arith.addf %54, %56 : vector<16x16xf32>
    %c0_26 = arith.constant 0 : index
    %c0_27 = arith.constant 0 : index
    %58 = vector.load %arg10[%c0_26, %c0_27] : memref<16x16xf32, #tpu.memory_space<vmem>>, vector<16x16xf32>
    tpu.vector_store %arg10[%c0_26, %c0_27], %57 {strides = array<i32>} : memref<16x16xf32, #tpu.memory_space<vmem>>, vector<16x16xf32>,
    return
  }
  func.func @transform_0(%arg0: i32) -> (i32, i32, i32) {
    %c0_i32 = arith.constant 0 : i32
    %c0_i32_0 = arith.constant 0 : i32
    %c0_i32_1 = arith.constant 0 : i32
    return %c0_i32, %arg0, %c0_i32_0 : i32, i32, i32
  }
  func.func @transform_1(%arg0: i32) -> (i32, i32) {
    %c0_i32 = arith.constant 0 : i32
    %c0_i32_0 = arith.constant 0 : i32
    %c0_i32_1 = arith.constant 0 : i32
    return %c0_i32, %c0_i32_0 : i32, i32
  }
  func.func @transform_2(%arg0: i32) -> (i32, i32) {
    %c0_i32 = arith.constant 0 : i32
    %c0_i32_0 = arith.constant 0 : i32
    %c0_i32_1 = arith.constant 0 : i32
    return %c0_i32, %c0_i32_0 : i32, i32
  }
  func.func @transform_3(%arg0: i32) -> (i32, i32) {
    %c0_i32 = arith.constant 0 : i32
    %c0_i32_0 = arith.constant 0 : i32
    %c0_i32_1 = arith.constant 0 : i32
    return %c0_i32, %c0_i32_0 : i32, i32
  }
  func.func @transform_4(%arg0: i32) -> (i32, i32) {
    %c0_i32 = arith.constant 0 : i32
    %c0_i32_0 = arith.constant 0 : i32
    %c0_i32_1 = arith.constant 0 : i32
    return %c0_i32, %c0_i32_0 : i32, i32
  }
  func.func @transform_5(%arg0: i32) -> (i32, i32) {
    %c0_i32 = arith.constant 0 : i32
    %c0_i32_0 = arith.constant 0 : i32
    %c0_i32_1 = arith.constant 0 : i32
    return %c0_i32, %c0_i32_0 : i32, i32
  }
  func.func @transform_6(%arg0: i32) -> (i32, i32) {
    %c0_i32 = arith.constant 0 : i32
    %c0_i32_0 = arith.constant 0 : i32
    %c0_i32_1 = arith.constant 0 : i32
    return %c0_i32, %c0_i32_0 : i32, i32
  }
  func.func @transform_7(%arg0: i32) -> (i32, i32) {
    %c0_i32 = arith.constant 0 : i32
    %c0_i32_0 = arith.constant 0 : i32
    %c0_i32_1 = arith.constant 0 : i32
    return %c0_i32, %c0_i32_0 : i32, i32
  }
  func.func @transform_8(%arg0: i32) -> (i32, i32) {
    %c0_i32 = arith.constant 0 : i32
    %c0_i32_0 = arith.constant 0 : i32
    %c0_i32_1 = arith.constant 0 : i32
    return %c0_i32, %c0_i32_0 : i32, i32
  }
  func.func @transform_9(%arg0: i32) -> (i32, i32) {
    %c0_i32 = arith.constant 0 : i32
    %c0_i32_0 = arith.constant 0 : i32
    return %arg0, %c0_i32 : i32, i32
  }
}

</mosaic_0001>

<bundles_post_ra>
// kernel: tpu_custom_call.1
= control target key start
LH: loop header
LB: loop body
LE: loop exit
PB: predicated region body
PF: predicated region fallthrough
CT: control target
= control target key end

     0   :  { %s1373_s30 = smov 0   ;;  %s1375_s10 = smov 0   ;;  %s1561_s0 = inlined_call_operand.vmem [shape: f32[4,32,32], index: 0, kind: input, shape index: {}]   ;;  %s1562_s1 = inlined_call_operand.vmem [shape: bf16[32,384], index: 1, kind: input, shape index: {}]   ;;  %s1563_s2 = inlined_call_operand.vmem [shape: f32[1,384], index: 2, kind: input, shape index: {}]   ;;  %s1564_s3 = inlined_call_operand.vmem [shape: bf16[384,16], index: 3, kind: input, shape index: {}]   ;;  %s1565_s4 = inlined_call_operand.vmem [shape: f32[1,16], index: 4, kind: input, shape index: {}]   ;;  %s1566_s5 = inlined_call_operand.vmem [shape: f32[1,16], index: 5, kind: input, shape index: {}]   ;;  %s1567_s6 = inlined_call_operand.vmem [shape: f32[1,16], index: 6, kind: input, shape index: {}]   ;;  %s1568_s7 = inlined_call_operand.vmem [shape: bf16[16,16], index: 7, kind: input, shape index: {}]   ;;  %s1569_s8 = inlined_call_operand.vmem [shape: f32[1,16], index: 8, kind: input, shape index: {}]   ;;  %s1570_s9 = inlined_call_operand.vmem [shape: f32[32,16], index: 9, kind: output, shape index: {}]  }
   0x1   :  { %s1377_s11 = smov 0  }
   0x2 LB: > { %s1097_s12 = sadd.s32 4294967295, %s1318_s11   ;;  %s1390_s13 = sadd.s32 1, %s1318_s11   ;;  %s1318_s11 = sphi %s1377_s11, %s1573_s11   ;;  %s1314_s10 = sphi %s1375_s10, %s1572_s10   ;;  %s1310_s30 = sphi %s1373_s30, %s1571_s30  }
   0x3   : > { %s23_s14 = ssub.s32 %s1318_s11, %s1390_s13  ;;  %s26_s15 = sadd.s32 1, %s1314_s10 }
   0x4   : > { %p24_p0 = scmp.eq.s32.totalorder %s23_s14, 0  ;;  %p33_p1 = scmp.ne.s32.totalorder %s1314_s10, %s1310_s30 }
   0x5   : > { %p34_p2 = scmp.eq.s32.totalorder %s1318_s11, 0  ;;  %p1100_p4 = scmp.ge.s32.totalorder %s1318_s11, 2 }
   0x6   : > { %s1399_s16 = scalar_select %p24_p0, %s1314_s10, %s26_s15  }
   0x7   : > { %p35_p3 = por %p34_p2, %p33_p1  ;;  %277 = sbr.rel (%p1100_p4) target bundleno = 22 (0x16), region = 48 }
   0xe   : > { %280 = sbr.rel (!%p35_p3) target bundleno = 22 (0x16), region = 52  ;;  %s282_s17 = sand.u32 (%p35_p3), 1, %s1314_s10  }
   0xf   : > { %s1154_s18 = sshll.u32 (%p35_p3), %s1318_s11, 4  ;;  %s1101_s19 = sshll.u32 (%p35_p3), %s282_s17, 6 }
  0x10   : > { %s287_s22 = scalar_lea.vmem (%p35_p3), %s1561_s0, %s1154_s18  ;;  %s284_s23 = scalar_lea.vmem (%p35_p3), [#allocation2], %s1101_s19 }
  0x11   : > { %v329_v0 = vld [vmem:[%s287_s22] sm:$0xff] (%p35_p3)  ;;  %v331_v1 = vld [vmem:[%s287_s22 + $0x8] sm:$0xff] (%p35_p3) }
  0x12   : > { %v333_v2 = vld [vmem:[%s287_s22 + $0x20] sm:$0xff] (%p35_p3)  ;;  %330 = vst [vmem:[%s284_s23] sm:$0xff] (%p35_p3), %v329_v0  ;;  %332 = vst [vmem:[%s284_s23 + $0x8] sm:$0xff] (%p35_p3), %v331_v1  ;;  %v335_v3 = vld [vmem:[%s287_s22 + $0x28] sm:$0xff] (%p35_p3) }
  0x13   : > { %334 = vst [vmem:[%s284_s23 + $0x10] sm:$0xff] (%p35_p3), %v333_v2  ;;  %v337_v4 = vld [vmem:[%s287_s22 + $0x40] sm:$0xff] (%p35_p3)  ;;  %v339_v5 = vld [vmem:[%s287_s22 + $0x48] sm:$0xff] (%p35_p3)  ;;  %336 = vst [vmem:[%s284_s23 + $0x18] sm:$0xff] (%p35_p3), %v335_v3 }
  0x14   : > { %338 = vst [vmem:[%s284_s23 + $0x20] sm:$0xff] (%p35_p3), %v337_v4  ;;  %340 = vst [vmem:[%s284_s23 + $0x28] sm:$0xff] (%p35_p3), %v339_v5  ;;  %v341_v6 = vld [vmem:[%s287_s22 + $0x60] sm:$0xff] (%p35_p3)  ;;  %v343_v7 = vld [vmem:[%s287_s22 + $0x68] sm:$0xff] (%p35_p3) }
  0x15   : > { %342 = vst [vmem:[%s284_s23 + $0x30] sm:$0xff] %v341_v6  ;;  %344 = vst [vmem:[%s284_s23 + $0x38] sm:$0xff] %v343_v7 }
  0x16 PF: > { %p1104_p5 = scmp.ge.s32.totalorder %s1318_s11, 1  ;;  %p349_p6 = scmp.lt.s32.totalorder %s1318_s11, 3 }
  0x18   : > { %p350_p7 = pnand %p1104_p5, %p349_p6 }
  0x19   : > { %v1259_v8 = vld [vmem:[%s1562_s1 + $0x4] ss:$12 sps:$4 sm:$0xff] (!%p350_p7)   ;;  %s356_s26 = sand.u32 (!%p350_p7), 1, %s1310_s30   ;;  %v1261_v9 = vld [vmem:[%s1562_s1] ss:$12 sps:$4 sm:$0xff] (!%p350_p7)   ;;  %v1320_v10 = vmov (!%p350_p7), 0   ;;  %v421_v52 = vlaneseq (!%p350_p7) }
  0x1a   : > { %353 = sbr.rel (%p350_p7) target bundleno = 892 (0x37c), region = 90  ;;  %513 = vmatprep.mubr.bf16.mxu0 (!%p350_p7), %v1320_v10  ;;  %s1105_s29 = sshll.u32 (!%p350_p7), %s356_s26, 6  ;;  %481 = vmatprep.subr.bf16.mxu0 (!%p350_p7), %v1259_v8  ;;  %v1262_v11 = vld [vmem:[%s1562_s1 + $0x1c] ss:$12 sps:$4 sm:$0xff] (!%p350_p7)   ;;  %v1264_v12 = vld [vmem:[%s1562_s1 + $0x18] ss:$12 sps:$4 sm:$0xff] (!%p350_p7)  }
  0x1b   : > { %482 = vmatpush1.bf16.msra.mxu0 (!%p350_p7), %v1261_v9  ;;  %s358_s19 = scalar_lea.vmem (!%p350_p7), [#allocation2], %s1105_s29  ;;  %v1265_v16 = vld [vmem:[%s1562_s1 + $0x8] ss:$12 sps:$4 sm:$0xff] (!%p350_p7)   ;;  %vm468_vm0 = vcmask (!%p350_p7), 261120   ;;  %v1266_v17 = vld [vmem:[%s1562_s1 + $0x20] ss:$12 sps:$4 sm:$0xff] (!%p350_p7)  }
  0x1c   : > { %v399_v13 = vld [vmem:[%s358_s19] sm:$0xff] (!%p350_p7)  ;;  %v400_v14 = vld [vmem:[%s358_s19 + $0x8] sm:$0xff] (!%p350_p7)  ;;  %483 = vmatprep.subr.bf16.mxu0 (!%p350_p7), %v1262_v11  ;;  %1194 = vmatprep.subr.bf16.mxu1 (!%p350_p7), %v1265_v16  ;;  %v401_v18 = vld [vmem:[%s358_s19 + $0x10] sm:$0xff] (!%p350_p7)  ;;  %v1321_v25 = vmov (!%p350_p7), 0.0   ;;  %vm1322_vm1 = vmmov (!%p350_p7), 0   ;;  %v422_v53 = vshrl.u32 (!%p350_p7), %v421_v52, 7 }
  0x1d   : > { %v407_v15 = vpack.c.bf16 (!%p350_p7), %v400_v14, %v399_v13  ;;  %1195 = vmatpush3.bf16.msra.mxu1 (!%p350_p7), %v1265_v16  ;;  %v402_v19 = vld [vmem:[%s358_s19 + $0x18] sm:$0xff] (!%p350_p7)  ;;  %v403_v20 = vld [vmem:[%s358_s19 + $0x20] sm:$0xff] (!%p350_p7)  ;;  %v404_v21 = vld [vmem:[%s358_s19 + $0x28] sm:$0xff] (!%p350_p7)  ;;  %vm921_vm2 = vcmask (!%p350_p7), 130048   ;;  %s1106_s18 = sshll.u32 (!%p350_p7), %s1097_s12, 1 }
  0x1e   : > { %1196 = vmatprep.subr.bf16.mxu1 (!%p350_p7), %v1266_v17  ;;  %v1267_v22 = vld [vmem:[%s1564_s3 + $0x80] sm:$0xff] (!%p350_p7)   ;;  %v408_v23 = vpack.c.bf16 (!%p350_p7), %v402_v19, %v401_v18  ;;  %v409_v24 = vpack.c.bf16 (!%p350_p7), %v404_v21, %v403_v20  ;;  %v405_v26 = vld [vmem:[%s358_s19 + $0x30] sm:$0xff] (!%p350_p7)  ;;  %v406_v27 = vld [vmem:[%s358_s19 + $0x38] sm:$0xff] (!%p350_p7)  ;;  %v431_v54 = vsub.s32 (!%p350_p7), 2, %v422_v53  ;;  %v423_v57 = vsub.s32 (!%p350_p7), 0, %v422_v53  ;;  %p393_p8 = scmp.lt.s32.totalorder (!%p350_p7), %s1106_s18, 3 }
  0x1f   : > { %1198 = vmatprep.mubr.msk.bf16.mxu1 (!%p350_p7), %vm468_vm0, %v407_v15  ;;  %484 = vmatpush1.bf16.msra.mxu0 (!%p350_p7), %v1264_v12  ;;  %v410_v28 = vpack.c.bf16 (!%p350_p7), %v406_v27, %v405_v26  ;;  %v1268_v29 = vld [vmem:[%s1564_s3 + $0x88] sm:$0xff] (!%p350_p7)   ;;  %v1269_v30 = vld [vmem:[%s1564_s3 + $0x40] sm:$0xff] (!%p350_p7)   ;;  %v1271_v32 = vld [vmem:[%s1564_s3 + $0x90] sm:$0xff] (!%p350_p7)   ;;  %v427_v60 = vsub.s32 (!%p350_p7), 1, %v422_v53 }
  0x20   : > { %v1270_v31 = vld [vmem:[%s1564_s3] sm:$0xff] (!%p350_p7)   ;;  %1161 = vmatprep.subr.bf16.mxu0 (!%p350_p7), %v1269_v30  ;;  %v1272_v33 = vld [vmem:[%s1564_s3 + $0x48] sm:$0xff] (!%p350_p7)   ;;  %v1274_v35 = vld [vmem:[%s1564_s3 + $0x98] sm:$0xff] (!%p350_p7)  }
  0x21   : > { %1197 = vmatpush3.bf16.msra.mxu1 %v1266_v17  ;;  %v1273_v34 = vld [vmem:[%s1564_s3 + $0x8] sm:$0xff]   ;;  %v1275_v36 = vld [vmem:[%s1564_s3 + $0x50] sm:$0xff]   ;;  %v1277_v38 = vld [vmem:[%s1564_s3 + $0xa0] sm:$0xff]   ;;  %s1575_s18 = smov (!%p393_p8, %s1106_s18), 3 }
  0x22   : > { %1114 = vmatmul.mubr.msk.bf16.vlgmr.msra.gmra.mrb[0].mxu0 %vm468_vm0, %v407_v15  ;;  %1206 = vmatprep.subr.bf16.mxu1 %v1321_v25  ;;  %v1276_v37 = vld [vmem:[%s1564_s3 + $0x10] sm:$0xff]   ;;  %v1278_v39 = vld [vmem:[%s1564_s3 + $0x58] sm:$0xff]   ;;  %v1280_v41 = vld [vmem:[%s1564_s3 + $0xa8] sm:$0xff]   ;;  %s1107_s19 = sshll.u32 %s1575_s18, 3 }
  0x23   : > { %523 = vmatprep.mubr.bf16.mxu0 %v1320_v10  ;;  %1162 = vmatpush3.bf16.msra.mxu0 %v1270_v31  ;;  %v1279_v40 = vld [vmem:[%s1564_s3 + $0x18] sm:$0xff]   ;;  %v1281_v42 = vld [vmem:[%s1564_s3 + $0x60] sm:$0xff]   ;;  %v1283_v44 = vld [vmem:[%s1564_s3 + $0xb0] sm:$0xff]   ;;  %s396_s23 = scalar_lea.vmem %s1570_s9, %s1107_s19 }
  0x24   : > { %1199 = vmatmul.mubr.msk.bf16.vlgmr.msra.gmra.mrb[0].mxu1 %vm468_vm0, %v408_v23  ;;  %1163 = vmatprep.subr.bf16.mxu0 %v1272_v33  ;;  %v1282_v43 = vld [vmem:[%s1564_s3 + $0x20] sm:$0xff]   ;;  %v1284_v45 = vld [vmem:[%s1564_s3 + $0x68] sm:$0xff]   ;;  %v1286_v47 = vld [vmem:[%s1564_s3 + $0xb8] sm:$0xff]  }
  0x25   : > { %1202 = vmatprep.mubr.msk.bf16.mxu1 %vm468_vm0, %v409_v24  ;;  %1207 = vmatpush3.bf16.msra.mxu1 %v1267_v22  ;;  %v1285_v46 = vld [vmem:[%s1564_s3 + $0x28] sm:$0xff]   ;;  %v1287_v48 = vld [vmem:[%s1564_s3 + $0x70] sm:$0xff]   ;;  %v1289_v50 = vld [vmem:[%s1564_s3 + $0x78] sm:$0xff]  }
  0x26   : > { %1208 = vmatprep.subr.bf16.mxu1 %v1321_v25  ;;  %v1288_v49 = vld [vmem:[%s1564_s3 + $0x30] sm:$0xff]   ;;  %v1290_v51 = vld [vmem:[%s1564_s3 + $0x38] sm:$0xff]   ;;  %v419_v55 = vld [vmem:[%s1563_s2] sm:$0x7] }
  0x27   : > { %1164 = vmatpush3.bf16.msra.mxu0 %v1273_v34  ;;  %v432_v59 = vrot.slane %v419_v55, %v431_v54  ;;  %v424_v0 = vrot.slane %v419_v55, %v423_v57  ;;  %v428_v3 = vrot.slane %v419_v55, %v427_v60 }
  0x28   : > { %1165 = vmatprep.subr.bf16.mxu0 %v1275_v36 }
  0x29   : > { %1209 = vmatpush3.bf16.msra.mxu1 %v1268_v29 }
  0x2a   : > { %1115 = vmatmul.mubr.msk.bf16.gmra.mrb[4].mxu0 %vm468_vm0, %v408_v23  ;;  %1210 = vmatprep.subr.bf16.mxu1 %v1321_v25 }
  0x2b   : > { %533 = vmatprep.mubr.bf16.mxu0 %v1320_v10  ;;  %1166 = vmatpush3.bf16.msra.mxu0 %v1276_v37 }
  0x2c   : > { %1203 = vmatmul.mubr.msk.bf16.gmra.mrb[4].mxu1 %vm468_vm0, %v410_v28  ;;  %1167 = vmatprep.subr.bf16.mxu0 %v1278_v39 }
  0x2d   : > { %1211 = vmatpush3.bf16.msra.mxu1 %v1271_v32  ;;  %1222 = vmatprep.mubr.msk.bf16.mxu1 %vm1322_vm1, %v1321_v25 }
  0x2e   : > { %1212 = vmatprep.subr.bf16.mxu1 %v1321_v25 }
  0x2f   : > { %1168 = vmatpush3.bf16.msra.mxu0 %v1279_v40 }
  0x30   : > { %1169 = vmatprep.subr.bf16.mxu0 %v1281_v42 }
  0x31   : > { %1213 = vmatpush3.bf16.msra.mxu1 %v1274_v35 }
  0x32   : > { %1116 = vmatmul.mubr.msk.bf16.gmra.mrb[8].mxu0 %vm468_vm0, %v409_v24  ;;  %1214 = vmatprep.subr.bf16.mxu1 %v1321_v25 }
  0x33   : > { %543 = vmatprep.mubr.bf16.mxu0 %v1320_v10  ;;  %1170 = vmatpush3.bf16.msra.mxu0 %v1282_v43 }
  0x34   : > { %1171 = vmatprep.subr.bf16.mxu0 %v1284_v45 }
  0x35   : > { %1215 = vmatpush3.bf16.msra.mxu1 %v1277_v38 }
  0x36   : > { %1216 = vmatprep.subr.bf16.mxu1 %v1321_v25 }
  0x37   : > { %1172 = vmatpush3.bf16.msra.mxu0 %v1285_v46 }
  0x38   : > { %1173 = vmatprep.subr.bf16.mxu0 %v1287_v48 }
  0x39   : > { %1217 = vmatpush3.bf16.msra.mxu1 %v1280_v41 }
  0x3a   : > { %1117 = vmatmul.mubr.msk.bf16.gmra.mrb[12].mxu0 %vm468_vm0, %v410_v28  ;;  %1218 = vmatprep.subr.bf16.mxu1 %v1321_v25 }
  0x3b   : > { %1174 = vmatpush3.bf16.msra.mxu0 %v1288_v49 }
  0x3c   : > { %1175 = vmatprep.subr.bf16.mxu0 %v1289_v50 }
  0x3d   : > { %1219 = vmatpush3.bf16.msra.mxu1 %v1283_v44 }
  0x3e   : > { %1220 = vmatprep.subr.bf16.mxu1 %v1321_v25 }
  0x3f   : > { %1176 = vmatpush3.bf16.msra.mxu0 %v1290_v51 }
  0x40   : > { %1226 = vmatprep.subr.bf16.mxu0 %v1321_v25 }
  0x41   : > { %1221 = vmatpush3.bf16.msra.mxu1 %v1286_v47 }
  0xf5   : > { %v515_v56 = vpop.f32.mrb[0].mxu0 }
  0xf6   : > { %v517_v58 = vpop.f32.mrb[1].mxu0  ;;  %v516_v11 = vadd.f32 %v515_v56, %v424_v0 }
  0xf7   : > { %v519_v61 = vpop.f32.mrb[2].mxu0  ;;  %v1200_v63 = vpop.f32.mrb[0].mxu1  ;;  %v518_v14 = vadd.f32 %v517_v58, %v428_v3 }
  0xf8   : > { %v521_v62 = vpop.f32.mrb[3].mxu0  ;;  %v597_v1 = vadd.f32 %v1200_v63, %v432_v59  ;;  %v588_v2 = vpop.f32.mrb[1].mxu1  ;;  %v520_v18 = vadd.f32 %v519_v61, %v424_v0 }
  0xf9   : > { %v589_v4 = vadd.f32 %v588_v2, %v432_v59  ;;  %v1201_v5 = vpop.f32.mrb[2].mxu1  ;;  %v522_v22 = vadd.f32 %v521_v62, %v428_v3 }
  0xfa   : > { %v600_v6 = vadd.f32 %v1201_v5, %v432_v59  ;;  %v591_v7 = vpop.f32.mrb[3].mxu1 }
  0xfb   : > { %v621_v9 = vmul.f32 %v597_v1, %v589_v4  ;;  %v592_v10 = vadd.f32 %v591_v7, %v432_v59 }
  0xfd   : > { %v525_v8 = vpop.f32.mrb[4].mxu0  ;;  %v624_v17 = vmul.f32 %v600_v6, %v592_v10 }
  0xfe   : > { %v526_v12 = vadd.f32 %v525_v8, %v424_v0  ;;  %v527_v13 = vpop.f32.mrb[5].mxu0 }
  0xff   : > { %v528_v15 = vadd.f32 %v527_v13, %v428_v3  ;;  %v529_v16 = vpop.f32.mrb[6].mxu0  ;;  %v1204_v26 = vpop.f32.mrb[4].mxu1 }
 0x100   : > { %v619_v19 = vmul.f32 %v526_v12, %v516_v11  ;;  %v530_v20 = vadd.f32 %v529_v16, %v424_v0  ;;  %v531_v21 = vpop.f32.mrb[7].mxu0  ;;  %v604_v28 = vpop.f32.mrb[5].mxu1  ;;  %v613_v30 = vadd.f32 %v1204_v26, %v432_v59 }
 0x101   : > { %v620_v23 = vmul.f32 %v528_v15, %v518_v14  ;;  %v532_v24 = vadd.f32 %v531_v21, %v428_v3  ;;  %v605_v31 = vadd.f32 %v604_v28, %v432_v59  ;;  %v1205_v32 = vpop.f32.mrb[6].mxu1 }
 0x102   : > { %v622_v27 = vmul.f32 %v530_v20, %v520_v18  ;;  %v607_v33 = vpop.f32.mrb[7].mxu1  ;;  %v616_v36 = vadd.f32 %v1205_v32, %v432_v59 }
 0x103   : > { %v623_v29 = vmul.f32 %v532_v24, %v522_v22  ;;  %v627_v35 = vmul.f32 %v621_v9, %v605_v31  ;;  %v608_v37 = vadd.f32 %v607_v33, %v432_v59 }
 0x105   : > { %v535_v34 = vpop.f32.mrb[8].mxu0  ;;  %v633_v41 = vmul.f32 %v627_v35, %v613_v30  ;;  %v630_v43 = vmul.f32 %v624_v17, %v608_v37 }
 0x106   : > { %v536_v38 = vadd.f32 %v535_v34, %v424_v0  ;;  %v537_v39 = vpop.f32.mrb[9].mxu0 }
 0x107   : > { %v538_v40 = vadd.f32 %v537_v39, %v428_v3  ;;  %v539_v42 = vpop.f32.mrb[10].mxu0  ;;  %v636_v49 = vmul.f32 %v630_v43, %v616_v36 }
 0x108   : > { %v625_v44 = vmul.f32 %v619_v19, %v536_v38  ;;  %v540_v45 = vadd.f32 %v539_v42, %v424_v0  ;;  %v541_v46 = vpop.f32.mrb[11].mxu0 }
 0x109   : > { %v626_v47 = vmul.f32 %v620_v23, %v538_v40  ;;  %v542_v48 = vadd.f32 %v541_v46, %v428_v3  ;;  %v639_v52 = vpack.c.bf16 %v636_v49, %v633_v41  ;;  %v1291_v23 = vld [vmem:[%s1568_s7] sm:$0xff]  }
 0x10a   : > { %v628_v50 = vmul.f32 %v622_v27, %v540_v45  ;;  %v1147_v41 = vld [vmem:[%s1566_s5] ss:$0 sm:$0xff] }
 0x10b   : > { %v629_v51 = vmul.f32 %v623_v29, %v542_v48  ;;  %1223 = vmatmul.mubr.bf16.vlgmr.msra.gmra.mrb[8].mxu1 %v639_v52  ;;  %v1148_v46 = vld [vmem:[%s1567_s6] ss:$0 sm:$0xff] }
 0x10d   : > { %v545_v53 = vpop.f32.mrb[12].mxu0 }
 0x10e   : > { %v546_v54 = vadd.f32 %v545_v53, %v424_v0  ;;  %v547_v55 = vpop.f32.mrb[13].mxu0 }
 0x10f   : > { %v548_v56 = vadd.f32 %v547_v55, %v428_v3  ;;  %v549_v57 = vpop.f32.mrb[14].mxu0 }
 0x110   : > { %v631_v58 = vmul.f32 %v625_v44, %v546_v54  ;;  %v550_v59 = vadd.f32 %v549_v57, %v424_v0  ;;  %v551_v60 = vpop.f32.mrb[15].mxu0  ;;  %v1122_v0 = vld [vmem:[%s1565_s4] ss:$0 sm:$0xff] }
 0x111   : > { %v632_v61 = vmul.f32 %v626_v47, %v548_v56  ;;  %v552_v62 = vadd.f32 %v551_v60, %v428_v3  ;;  %v1149_v54 = vld [vmem:[%s1569_s8] ss:$0 sm:$0xff] }
 0x112   : > { %v634_v63 = vmul.f32 %v628_v50, %v550_v59 }
 0x113   : > { %v635_v1 = vmul.f32 %v629_v51, %v552_v62 }
 0x114   : > { %v637_v2 = vpack.c.bf16 %v634_v63, %v631_v58 }
 0x115   : > { %v638_v4 = vpack.c.bf16 %v635_v1, %v632_v61 }
 0x117   : > { %871 = vmatprep.mubr.bf16.mxu0 %v638_v4 }
 0x118   : > { %872 = vmatmul.mubr.bf16.vlgmr.msra.gmra.mrb[16].mxu0 %v637_v2 }
 0x119   : > { %1228 = vmatprep.mubr.msk.bf16.mxu0 %vm1322_vm1, %v1321_v25  ;;  %1227 = vmatpush3.bf16.msra.mxu0 %v1291_v23 }
 0x1de   : > { %v914_v5 = vpop.f32.mrb[8].mxu1 }
 0x1df   : > { %v1224_v6 = vpop.f32.mrb[9].mxu1 }
 0x1e0   : > { %v917_v7 = vpop.f32.mrb[10].mxu1 }
 0x1e1   : > { %v1225_v8 = vpop.f32.mrb[11].mxu1 }
 0x1eb   : > { %v1177_v9 = vpop.f32.mrb[16].mxu0 }
 0x1ec   : > { %v1178_v10 = vpop.f32.mrb[17].mxu0 }
 0x1ed   : > { %v1179_v3 = vadd.f32 %v1178_v10, %v1177_v9  ;;  %v1180_v11 = vpop.f32.mrb[18].mxu0 }
 0x1ee   : > { %v1181_v12 = vpop.f32.mrb[19].mxu0 }
 0x1ef   : > { %v874_v13 = vadd.f32 %v1179_v3, %v1122_v0  ;;  %v1182_v14 = vadd.f32 %v1181_v12, %v1180_v11 }
 0x1f1   : > { %v877_v15 = vadd.f32 %v1182_v14, %v1122_v0  ;;  %v915_v16 = vadd.f32 %v914_v5, %v874_v13 }
 0x1f3   : > { %v918_v17 = vadd.f32 %v917_v7, %v877_v15  ;;  %v922_v25 = vsel %vm921_vm2, %v915_v16, 0.0  ;;  %v931_v18 = vmul.f32 %v915_v16, %v915_v16 }
 0x1f4   : > { %923 = vadd.xlane.f32.xlu0 %v922_v25 }
 0x1f5   : > { %v933_v19 = vsel %vm921_vm2, %v931_v18, 0.0  ;;  %v932_v20 = vmul.f32 %v918_v17, %v918_v17  ;;  %v925_v21 = vsel %vm921_vm2, %v918_v17, 0.0 }
 0x1f6   : > { %934 = vadd.xlane.f32.xlu1 %v933_v19 }
 0x1f7   : > { %v936_v22 = vsel %vm921_vm2, %v932_v20, 0.0 }
 0x1f8   : > { %926 = vadd.xlane.f32.xlu0 %v925_v21 }
 0x1fa   : > { %937 = vadd.xlane.f32.xlu1 %v936_v22 }
 0x281   : > { %v924_v24 = vpop.xlane.xlu0 %923 }
 0x282   : > { %v929_v26 = vmul.f32 0.0625, %v924_v24 }
 0x283   : > { %v935_v27 = vpop.xlane.xlu1 %934 }
 0x284   : > { %v941_v28 = vmul.f32 %v929_v26, %v929_v26  ;;  %v939_v29 = vmul.f32 0.0625, %v935_v27  ;;  %v945_v39 = vsub.f32 %v915_v16, %v929_v26 }
 0x285   : > { %v927_v30 = vpop.xlane.xlu0 %926 }
 0x286   : > { %v943_v31 = vsub.f32 %v939_v29, %v941_v28  ;;  %v930_v32 = vmul.f32 0.0625, %v927_v30 }
 0x287   : > { %v938_v33 = vpop.xlane.xlu1 %937 }
 0x288   : > { %v947_v34 = vadd.f32 1e-05, %v943_v31  ;;  %v942_v35 = vmul.f32 %v930_v32, %v930_v32  ;;  %v940_v36 = vmul.f32 0.0625, %v938_v33  ;;  %v946_v43 = vsub.f32 %v918_v17, %v930_v32 }
 0x28a   : > { %1292 = vrsqrt.f32 %v947_v34  ;;  %v944_v37 = vsub.f32 %v940_v36, %v942_v35 }
 0x28c   : > { %v948_v38 = vadd.f32 1e-05, %v944_v37 }
 0x28e   : > { %1294 = vrsqrt.f32 %v948_v38 }
 0x294   : > { %v1293_v40 = vpop.eup %1292 }
 0x295   : > { %v951_v42 = vmul.f32 %v1293_v40, %v945_v39 }
 0x297   : > { %v960_v44 = vmul.f32 %v1147_v41, %v951_v42 }
 0x298   : > { %v1295_v45 = vpop.eup %1294 }
 0x299   : > { %v952_v47 = vmul.f32 %v1295_v45, %v946_v43  ;;  %v969_v49 = vadd.f32 %v1148_v46, %v960_v44 }
 0x29b   : > { %v961_v48 = vmul.f32 %v1147_v41, %v952_v47  ;;  %v971_v51 = vmax.f32 %v969_v49, 0.0 }
 0x29d   : > { %v970_v50 = vadd.f32 %v1148_v46, %v961_v48 }
 0x29f   : > { %v972_v52 = vmax.f32 %v970_v50, 0.0 }
 0x2a1   : > { %v973_v53 = vpack.c.bf16 %v972_v52, %v971_v51 }
 0x2a3   : > { %1229 = vmatmul.mubr.msk.bf16.vlgmr.msra.gmra.mrb[20].mxu0 %vm921_vm2, %v973_v53 }
 0x376   : > { %v1026_v55 = vpop.f32.mrb[20].mxu0 }
 0x377   : > { %v1027_v56 = vadd.f32 %v1149_v54, %v1026_v55  ;;  %v1230_v57 = vpop.f32.mrb[21].mxu0 }
 0x378   : > { %v1029_v58 = vpop.f32.mrb[22].mxu0 }
 0x379   : > { %1033 = vst.msk [vmem:[%s396_s23] sm:$0xff] %vm921_vm2, %v1027_v56  ;;  %v1030_v59 = vadd.f32 %v1149_v54, %v1029_v58  ;;  %v1231_v60 = vpop.f32.mrb[23].mxu0 }
 0x37b   : > { %1034 = vst.msk [vmem:[%s396_s23 + $0x8] sm:$0xff] %vm921_vm2, %v1030_v59 }
 0x37c PF: > { %p16_p9 = scmp.ge.s32.totalorder %s1390_s13, 4   ;;  %s1571_s30 = smov %s1314_s10 }
 0x37d   : > { %s1572_s10 = smov %s1399_s16  ;;  %s1573_s11 = smov %s1390_s13 }
 0x37e   :  { %18 = sbr.rel (!%p16_p9) target bundleno = 2 (0x2), region = 129 }

</bundles_post_ra>
